<compile_context>
chip_gen: v7x
topology: tpu7x:2x2x1
jax: 0.10.0
libtpu: 0.0.40
codegen_flags: <defaults>
</compile_context>

<pallas_src>
import jax
import jax.numpy as jnp
from jax.experimental import pallas as pl
from jax.experimental.pallas import tpu as pltpu

_LANE = 128


def _round_up(x, m):
    return ((x + m - 1) // m) * m


def _elu(x):
    # F.elu with default alpha=1.0
    return jnp.where(x > 0, x, jnp.exp(x) - 1.0)


# ----------------------------------------------------------------------------
# Kernel
# ----------------------------------------------------------------------------
def prd_mlp_kernel(p_ref,
                   w1_ref, b1_ref,
                   w2_ref, b2_ref,
                   w3_ref, b3_ref,
                   w4_ref, b4_ref,
                   out_ref):
    # p_ref: (TB, p_dim); weights are lane-padded, bf16 for the MXU layers.
    x = p_ref[...].astype(jnp.bfloat16)

    h = jnp.dot(x, w1_ref[...], preferred_element_type=jnp.float32) + b1_ref[...]
    h = _elu(h)                                                # (TB, H1p) f32

    h = jnp.dot(h.astype(jnp.bfloat16), w2_ref[...],
                preferred_element_type=jnp.float32) + b2_ref[...]
    h = _elu(h)                                                # (TB, H2p) f32

    h = jnp.dot(h.astype(jnp.bfloat16), w3_ref[...],
                preferred_element_type=jnp.float32) + b3_ref[...]
    h = _elu(h)                                                # (TB, H3p) f32

    # Final layer has a single output column: keep it off the MXU.
    # VPU multiply + lane reduction (XLU slot, otherwise idle in this kernel).
    out = jnp.sum(h * w4_ref[...], axis=-1, keepdims=True) + b4_ref[...]
    out_ref[...] = out.astype(out_ref.dtype)                   # (TB, 1)


# ----------------------------------------------------------------------------
# Parameter preparation (done once, not per call)
# ----------------------------------------------------------------------------
def prepare_params(params):
    """Lane-pad hidden dims to 128, cast MXU weights to bf16, and turn the
    final (H3, 1) weight into a (1, H3p) f32 row for the VPU reduction."""
    def pad2(a, rows, cols):
        return jnp.pad(a, ((0, rows - a.shape[0]), (0, cols - a.shape[1])))

    w1, b1 = params["w1"], params["b1"]
    w2, b2 = params["w2"], params["b2"]
    w3, b3 = params["w3"], params["b3"]
    w4, b4 = params["w4"], params["b4"]

    p_dim = w1.shape[0]
    H1p = _round_up(w1.shape[1], _LANE)
    H2p = _round_up(w2.shape[1], _LANE)
    H3p = _round_up(w3.shape[1], _LANE)

    return {
        "w1": pad2(w1, p_dim, H1p).astype(jnp.bfloat16),
        "b1": pad2(b1, 1, H1p).astype(jnp.float32),
        "w2": pad2(w2, H1p, H2p).astype(jnp.bfloat16),
        "b2": pad2(b2, 1, H2p).astype(jnp.float32),
        "w3": pad2(w3, H2p, H3p).astype(jnp.bfloat16),
        "b3": pad2(b3, 1, H3p).astype(jnp.float32),
        "w4_row": pad2(w4.T, 1, H3p).astype(jnp.float32),   # (1, H3p)
        "b4": b4.astype(jnp.float32),                        # (1, 1)
    }


# ----------------------------------------------------------------------------
# Wrapper
# ----------------------------------------------------------------------------
def prd_model_forward(p, prepared, *, block_batch=2048):
    """p: (B, p_dim). prepared: output of prepare_params. Returns (B, 1) f32."""
    B, p_dim = p.shape

    # Batch tile: large tiles amortize the ~0.35us per-grid-step overhead;
    # shrink gracefully for small B (multiple of 8 = f32 sublane).
    TB = min(block_batch, _round_up(B, 8))
    B_pad = _round_up(B, TB)
    if B_pad != B:
        p = jnp.pad(p, ((0, B_pad - B), (0, 0)))     # zero rows, sliced off below

    args = (p,
            prepared["w1"], prepared["b1"],
            prepared["w2"], prepared["b2"],
            prepared["w3"], prepared["b3"],
            prepared["w4_row"], prepared["b4"])

    H1p = prepared["w1"].shape[1]
    H2p = prepared["w2"].shape[1]
    H3p = prepared["w3"].shape[1]

    # Weights/biases: full-array blocks, constant index_map -> fetched once,
    # resident across the whole grid.
    const_specs = [
        pl.BlockSpec(a.shape, lambda i: (0, 0)) for a in args[1:]
    ]
    in_specs = [pl.BlockSpec((TB, p_dim), lambda i: (i, 0))] + const_specs

    param_bytes = sum(a.size * a.dtype.itemsize for a in args[1:])
    cost = pl.CostEstimate(
        flops=2 * B_pad * (p_dim * H1p + H1p * H2p + H2p * H3p + H3p),
        transcendentals=B_pad * (H1p + H2p + H3p),
        bytes_accessed=p.size * p.dtype.itemsize + B_pad * 4 + param_bytes,
    )

    out = pl.pallas_call(
        prd_mlp_kernel,
        out_shape=jax.ShapeDtypeStruct((B_pad, 1), jnp.float32),
        grid=(B_pad // TB,),
        in_specs=in_specs,
        out_specs=pl.BlockSpec((TB, 1), lambda i: (i, 0)),
        compiler_params=pltpu.CompilerParams(
            dimension_semantics=("parallel",)),
        cost_estimate=cost,
    )(*args)

    return out[:B]


# ----------------------------------------------------------------------------
# Init + references
# ----------------------------------------------------------------------------
def init_params(key, p_dim, hidden_dims):
    """Mimics nn.Linear's U(-1/sqrt(fan_in), 1/sqrt(fan_in)) init.
    Weights stored as (in, out) (transposed vs torch's (out, in))."""
    dims = [p_dim, hidden_dims[0], hidden_dims[1], hidden_dims[2], 1]
    params = {}
    for i in range(4):
        fan_in, fan_out = dims[i], dims[i + 1]
        key, kw, kb = jax.random.split(key, 3)
        bound = 1.0 / jnp.sqrt(jnp.float32(fan_in))
        params[f"w{i+1}"] = jax.random.uniform(
            kw, (fan_in, fan_out), jnp.float32, minval=-bound, maxval=bound)
        params[f"b{i+1}"] = jax.random.uniform(
            kb, (1, fan_out), jnp.float32, minval=-bound, maxval=bound)
    return params


def reference_forward_f32(p, params):
    h = p
    for i in (1, 2, 3):
        h = _elu(h @ params[f"w{i}"] + params[f"b{i}"])
    return h @ params["w4"] + params["b4"]


def reference_forward_bf16(p, prepared):
    """Pure-JAX reference that mimics the kernel numerics (bf16 matmul
    operands, f32 accumulation, lane-padded weights)."""
    h = p
    for i in (1, 2, 3):
        h = jnp.dot(h.astype(jnp.bfloat16), prepared[f"w{i}"],
                    preferred_element_type=jnp.float32) + prepared[f"b{i}"]
        h = _elu(h)
    return jnp.sum(h * prepared["w4_row"], axis=-1, keepdims=True) + prepared["b4"]


# ----------------------------------------------------------------------------
# Test
# ----------------------------------------------------------------------------
if __name__ == "__main__":
    # Small synthetic config: args.p_dim = 32, args.prd_hidden_dim = [64, 64, 32]
    p_dim = 32
    hidden_dims = (64, 64, 32)

    key = jax.random.PRNGKey(0)
    key, kx1, kx2 = jax.random.split(key, 3)
    params = init_params(key, p_dim, hidden_dims)
    prepared = prepare_params(params)

    # Case 1: tiny batch (single grid step, tile shrinks to batch size).
    batch = 8
    p = jax.random.normal(kx1, (batch, p_dim), dtype=jnp.float32)
    out = jax.block_until_ready(prd_model_forward(p, prepared))
    assert out.shape == (batch, 1)
    ref32 = reference_forward_f32(p, params)
    refbf = reference_forward_bf16(p, prepared)
    assert jnp.allclose(out, refbf, atol=1e-3, rtol=1e-3), "mismatch vs bf16 reference"
    assert jnp.allclose(out, ref32, atol=5e-2, rtol=5e-2), "mismatch vs f32 reference"

    # Case 2: batch not a multiple of the tile (grid > 1, remainder padding).
    batch2 = 300
    p2 = jax.random.normal(kx2, (batch2, p_dim), dtype=jnp.float32)
    out2 = jax.block_until_ready(prd_model_forward(p2, prepared, block_batch=128))
    assert out2.shape == (batch2, 1)
    ref32_2 = reference_forward_f32(p2, params)
    refbf_2 = reference_forward_bf16(p2, prepared)
    assert jnp.allclose(out2, refbf_2, atol=1e-3, rtol=1e-3), "mismatch vs bf16 reference (grid)"
    assert jnp.allclose(out2, ref32_2, atol=5e-2, rtol=5e-2), "mismatch vs f32 reference (grid)"

    print("KERNEL_OK")
</pallas_src>

<mosaic_0001>
module attributes {stable_mosaic.version = 11 : i64} {
  func.func @prd_mlp_kernel(%arg0: i32, %arg1: memref<8x32xf32, #tpu.memory_space<vmem>>, %arg2: memref<32x128xbf16, #tpu.memory_space<vmem>>, %arg3: memref<1x128xf32, #tpu.memory_space<vmem>>, %arg4: memref<128x128xbf16, #tpu.memory_space<vmem>>, %arg5: memref<1x128xf32, #tpu.memory_space<vmem>>, %arg6: memref<128x128xbf16, #tpu.memory_space<vmem>>, %arg7: memref<1x128xf32, #tpu.memory_space<vmem>>, %arg8: memref<1x128xf32, #tpu.memory_space<vmem>>, %arg9: memref<1x1xf32, #tpu.memory_space<vmem>>, %arg10: memref<8x1xf32, #tpu.memory_space<vmem>>) attributes {dimension_semantics = [#tpu.dimension_semantics<parallel>], iteration_bounds = array<i64: 1>, scalar_prefetch = 0 : i64, scratch_operands = 0 : i64, tpu.core_type = #tpu.core_type<tc>, window_params = [{transform_indices = @transform_0, window_bounds = array<i64: 8, 32>}, {pipeline_mode = #tpu.pipeline_mode<synchronous>, transform_indices = @transform_1, window_bounds = array<i64: 32, 128>}, {pipeline_mode = #tpu.pipeline_mode<synchronous>, transform_indices = @transform_2, window_bounds = array<i64: 1, 128>}, {pipeline_mode = #tpu.pipeline_mode<synchronous>, transform_indices = @transform_3, window_bounds = array<i64: 128, 128>}, {pipeline_mode = #tpu.pipeline_mode<synchronous>, transform_indices = @transform_4, window_bounds = array<i64: 1, 128>}, {pipeline_mode = #tpu.pipeline_mode<synchronous>, transform_indices = @transform_5, window_bounds = array<i64: 128, 128>}, {pipeline_mode = #tpu.pipeline_mode<synchronous>, transform_indices = @transform_6, window_bounds = array<i64: 1, 128>}, {pipeline_mode = #tpu.pipeline_mode<synchronous>, transform_indices = @transform_7, window_bounds = array<i64: 1, 128>}, {pipeline_mode = #tpu.pipeline_mode<synchronous>, transform_indices = @transform_8, window_bounds = array<i64: 1, 1>}, {transform_indices = @transform_9, window_bounds = array<i64: 8, 1>}]} {
    %c0 = arith.constant 0 : index
    %c0_0 = arith.constant 0 : index
    %0 = vector.load %arg1[%c0, %c0_0] : memref<8x32xf32, #tpu.memory_space<vmem>>, vector<8x32xf32>
    %1 = arith.truncf %0 : vector<8x32xf32> to vector<8x32xbf16>
    %c0_1 = arith.constant 0 : index
    %c0_2 = arith.constant 0 : index
    %2 = vector.load %arg2[%c0_1, %c0_2] : memref<32x128xbf16, #tpu.memory_space<vmem>>, vector<32x128xbf16>
    %cst = arith.constant dense<0.000000e+00> : vector<8x128xf32>
    %3 = tpu.matmul %1, %2, %cst {dimension_numbers = #tpu.dot_dimension_numbers<[1], [0], [0], [1], [0, 0, 1, 1], [], []>} : vector<8x32xbf16>, vector<32x128xbf16>, vector<8x128xf32> -> vector<8x128xf32>
    %c0_3 = arith.constant 0 : index
    %c0_4 = arith.constant 0 : index
    %4 = vector.load %arg3[%c0_3, %c0_4] : memref<1x128xf32, #tpu.memory_space<vmem>>, vector<1x128xf32>
    %5 = vector.broadcast %4 : vector<1x128xf32> to vector<8x128xf32>
    %6 = arith.addf %3, %5 : vector<8x128xf32>
    %cst_5 = arith.constant 0.000000e+00 : f32
    %7 = vector.broadcast %cst_5 : f32 to vector<8x128xf32>
    %8 = arith.cmpf ogt, %6, %7 : vector<8x128xf32>
    %9 = math.exp %6 : vector<8x128xf32>
    %cst_6 = arith.constant 1.000000e+00 : f32
    %10 = vector.broadcast %cst_6 : f32 to vector<8x128xf32>
    %11 = arith.subf %9, %10 : vector<8x128xf32>
    %12 = arith.select %8, %6, %11 : vector<8x128xi1>, vector<8x128xf32>
    %13 = arith.truncf %12 : vector<8x128xf32> to vector<8x128xbf16>
    %c0_7 = arith.constant 0 : index
    %c0_8 = arith.constant 0 : index
    %14 = vector.load %arg4[%c0_7, %c0_8] : memref<128x128xbf16, #tpu.memory_space<vmem>>, vector<128x128xbf16>
    %cst_9 = arith.constant dense<0.000000e+00> : vector<8x128xf32>
    %15 = tpu.matmul %13, %14, %cst_9 {dimension_numbers = #tpu.dot_dimension_numbers<[1], [0], [0], [1], [0, 0, 1, 1], [], []>} : vector<8x128xbf16>, vector<128x128xbf16>, vector<8x128xf32> -> vector<8x128xf32>
    %c0_10 = arith.constant 0 : index
    %c0_11 = arith.constant 0 : index
    %16 = vector.load %arg5[%c0_10, %c0_11] : memref<1x128xf32, #tpu.memory_space<vmem>>, vector<1x128xf32>
    %17 = vector.broadcast %16 : vector<1x128xf32> to vector<8x128xf32>
    %18 = arith.addf %15, %17 : vector<8x128xf32>
    %cst_12 = arith.constant 0.000000e+00 : f32
    %19 = vector.broadcast %cst_12 : f32 to vector<8x128xf32>
    %20 = arith.cmpf ogt, %18, %19 : vector<8x128xf32>
    %21 = math.exp %18 : vector<8x128xf32>
    %cst_13 = arith.constant 1.000000e+00 : f32
    %22 = vector.broadcast %cst_13 : f32 to vector<8x128xf32>
    %23 = arith.subf %21, %22 : vector<8x128xf32>
    %24 = arith.select %20, %18, %23 : vector<8x128xi1>, vector<8x128xf32>
    %25 = arith.truncf %24 : vector<8x128xf32> to vector<8x128xbf16>
    %c0_14 = arith.constant 0 : index
    %c0_15 = arith.constant 0 : index
    %26 = vector.load %arg6[%c0_14, %c0_15] : memref<128x128xbf16, #tpu.memory_space<vmem>>, vector<128x128xbf16>
    %cst_16 = arith.constant dense<0.000000e+00> : vector<8x128xf32>
    %27 = tpu.matmul %25, %26, %cst_16 {dimension_numbers = #tpu.dot_dimension_numbers<[1], [0], [0], [1], [0, 0, 1, 1], [], []>} : vector<8x128xbf16>, vector<128x128xbf16>, vector<8x128xf32> -> vector<8x128xf32>
    %c0_17 = arith.constant 0 : index
    %c0_18 = arith.constant 0 : index
    %28 = vector.load %arg7[%c0_17, %c0_18] : memref<1x128xf32, #tpu.memory_space<vmem>>, vector<1x128xf32>
    %29 = vector.broadcast %28 : vector<1x128xf32> to vector<8x128xf32>
    %30 = arith.addf %27, %29 : vector<8x128xf32>
    %cst_19 = arith.constant 0.000000e+00 : f32
    %31 = vector.broadcast %cst_19 : f32 to vector<8x128xf32>
    %32 = arith.cmpf ogt, %30, %31 : vector<8x128xf32>
    %33 = math.exp %30 : vector<8x128xf32>
    %cst_20 = arith.constant 1.000000e+00 : f32
    %34 = vector.broadcast %cst_20 : f32 to vector<8x128xf32>
    %35 = arith.subf %33, %34 : vector<8x128xf32>
    %36 = arith.select %32, %30, %35 : vector<8x128xi1>, vector<8x128xf32>
    %c0_21 = arith.constant 0 : index
    %c0_22 = arith.constant 0 : index
    %37 = vector.load %arg8[%c0_21, %c0_22] : memref<1x128xf32, #tpu.memory_space<vmem>>, vector<1x128xf32>
    %38 = vector.broadcast %37 : vector<1x128xf32> to vector<8x128xf32>
    %39 = arith.mulf %36, %38 : vector<8x128xf32>
    %cst_23 = arith.constant dense<0.000000e+00> : vector<8xf32>
    %40 = vector.multi_reduction <add>, %39, %cst_23 [1] : vector<8x128xf32> to vector<8xf32>
    %41 = vector.shape_cast %40 : vector<8xf32> to vector<8x1xf32>
    %c0_24 = arith.constant 0 : index
    %c0_25 = arith.constant 0 : index
    %42 = vector.load %arg9[%c0_24, %c0_25] : memref<1x1xf32, #tpu.memory_space<vmem>>, vector<1x1xf32>
    %43 = vector.broadcast %42 : vector<1x1xf32> to vector<8x1xf32>
    %44 = arith.addf %41, %43 : vector<8x1xf32>
    %c0_26 = arith.constant 0 : index
    %c0_27 = arith.constant 0 : index
    %45 = vector.load %arg10[%c0_26, %c0_27] : memref<8x1xf32, #tpu.memory_space<vmem>>, vector<8x1xf32>
    tpu.vector_store %arg10[%c0_26, %c0_27], %44 {strides = array<i32>} : memref<8x1xf32, #tpu.memory_space<vmem>>, vector<8x1xf32>,
    return
  }
  func.func @transform_0(%arg0: i32) -> (i32, i32) {
    %c0_i32 = arith.constant 0 : i32
    %c0_i32_0 = arith.constant 0 : i32
    return %arg0, %c0_i32 : i32, i32
  }
  func.func @transform_1(%arg0: i32) -> (i32, i32) {
    %c0_i32 = arith.constant 0 : i32
    %c0_i32_0 = arith.constant 0 : i32
    %c0_i32_1 = arith.constant 0 : i32
    return %c0_i32, %c0_i32_0 : i32, i32
  }
  func.func @transform_2(%arg0: i32) -> (i32, i32) {
    %c0_i32 = arith.constant 0 : i32
    %c0_i32_0 = arith.constant 0 : i32
    %c0_i32_1 = arith.constant 0 : i32
    return %c0_i32, %c0_i32_0 : i32, i32
  }
  func.func @transform_3(%arg0: i32) -> (i32, i32) {
    %c0_i32 = arith.constant 0 : i32
    %c0_i32_0 = arith.constant 0 : i32
    %c0_i32_1 = arith.constant 0 : i32
    return %c0_i32, %c0_i32_0 : i32, i32
  }
  func.func @transform_4(%arg0: i32) -> (i32, i32) {
    %c0_i32 = arith.constant 0 : i32
    %c0_i32_0 = arith.constant 0 : i32
    %c0_i32_1 = arith.constant 0 : i32
    return %c0_i32, %c0_i32_0 : i32, i32
  }
  func.func @transform_5(%arg0: i32) -> (i32, i32) {
    %c0_i32 = arith.constant 0 : i32
    %c0_i32_0 = arith.constant 0 : i32
    %c0_i32_1 = arith.constant 0 : i32
    return %c0_i32, %c0_i32_0 : i32, i32
  }
  func.func @transform_6(%arg0: i32) -> (i32, i32) {
    %c0_i32 = arith.constant 0 : i32
    %c0_i32_0 = arith.constant 0 : i32
    %c0_i32_1 = arith.constant 0 : i32
    return %c0_i32, %c0_i32_0 : i32, i32
  }
  func.func @transform_7(%arg0: i32) -> (i32, i32) {
    %c0_i32 = arith.constant 0 : i32
    %c0_i32_0 = arith.constant 0 : i32
    %c0_i32_1 = arith.constant 0 : i32
    return %c0_i32, %c0_i32_0 : i32, i32
  }
  func.func @transform_8(%arg0: i32) -> (i32, i32) {
    %c0_i32 = arith.constant 0 : i32
    %c0_i32_0 = arith.constant 0 : i32
    %c0_i32_1 = arith.constant 0 : i32
    return %c0_i32, %c0_i32_0 : i32, i32
  }
  func.func @transform_9(%arg0: i32) -> (i32, i32) {
    %c0_i32 = arith.constant 0 : i32
    %c0_i32_0 = arith.constant 0 : i32
    return %arg0, %c0_i32 : i32, i32
  }
}

</mosaic_0001>

<bundles_post_ra>
// kernel: tpu_custom_call.1
= control target key start
LH: loop header
LB: loop body
LE: loop exit
PB: predicated region body
PF: predicated region fallthrough
CT: control target
= control target key end

     0   :  { %s802_s0 = inlined_call_operand.hbm [shape: f32[8,32], index: 0, kind: input, shape index: {}]   ;;  %s803_s1 = inlined_call_operand.hbm [shape: bf16[32,128], index: 1, kind: input, shape index: {}]   ;;  %s804_s2 = inlined_call_operand.vmem [shape: f32[1,128], index: 2, kind: input, shape index: {}]   ;;  %s805_s3 = inlined_call_operand.hbm [shape: bf16[128,128], index: 3, kind: input, shape index: {}]   ;;  %s806_s4 = inlined_call_operand.vmem [shape: f32[1,128], index: 4, kind: input, shape index: {}]   ;;  %s807_s5 = inlined_call_operand.hbm [shape: bf16[128,128], index: 5, kind: input, shape index: {}]   ;;  %s808_s6 = inlined_call_operand.vmem [shape: f32[1,128], index: 6, kind: input, shape index: {}]   ;;  %s809_s7 = inlined_call_operand.vmem [shape: f32[1,128], index: 7, kind: input, shape index: {}]   ;;  %s810_s8 = inlined_call_operand.<no memory space> [shape: f32[1,1], index: 8, kind: input, shape index: {}]   ;;  %s811_s9 = inlined_call_operand.vmem [shape: f32[8,1], index: 9, kind: output, shape index: {}]  }
   0x1   :  { %v14_v0 = vstv %s810_s8 }
   0x2   :  { %15 = vst [vmem:[#allocation2] sm:$0x1] %v14_v0 }
   0x3   :  { %16 = vsyncpa [#allocation4], 0 }
   0x4   :  { %17 = vsyncpa [#allocation6], 0 }
   0x5   :  { %18 = vsyncpa [#allocation9], 0  ;;  %s645_s11 = smov [#allocation5]   ;;  %s551_s15 = scalar_lea.hbm %s803_s1, 256 }
   0x6   :  { %s34_s12 = sshll.u32 %s645_s11, 4  ;;  %p552_p0 = scmp.ne.s32.totalorder %s803_s1, %s551_s15  ;;  %s35_s12 = int_to_ptr.vmem [resolvable:$true] %s34_s12 }
   0x7   :  { %p555_p1 = scmp.lt.u32.totalorder %s551_s15, %s803_s1 }
   0x9   :  { %p557_p2 = pnand %p555_p1, %p552_p0 }
   0xb   :  { %560 = shalt.err (!%p557_p2)
}
   0xc   :  { %s561_s8 = scalar_lea.vmem %s35_s12, 256  ;;  %p566_p4 = scmp.lt.s32.totalorder %s35_s12, %s35_s12 }
   0xd   :  { %p562_p3 = scmp.ne.s32.totalorder %s35_s12, %s561_s8  ;;  %p567_p5 = scmp.lt.s32.totalorder %s561_s8, %s561_s8 }
   0xf   :  { %p568_p6 = por %p567_p5, %p566_p4 }
  0x11   :  { %p569_p7 = pnand %p568_p6, %p562_p3 }
  0x13   :  { %572 = shalt.err (!%p569_p7)
}
  0x14   :  { %s646_s20 = smov 64   ;;  %s647_s21 = smov 4  }
  0x15   :  { %40 = dma.hbm_to_vmem [thread:$0]  %s803_s1, 256, %s35_s12, [#allocation6], %s646_s20, %s646_s20, %s647_s21  }
  0x16   :  { %s648_s24 = smov [#allocation3]   ;;  %s649_s26 = smov [#allocation7]  }
  0x17   :  { %s25_s25 = sshll.u32 %s648_s24, 4  ;;  %s48_s27 = sshll.u32 %s649_s26, 4  ;;  %s26_s25 = int_to_ptr.vmem [resolvable:$true] %s25_s25  ;;  %s49_s27 = int_to_ptr.vmem [resolvable:$true] %s48_s27 }
  0x18   :  { %s573_s30 = scalar_lea.hbm %s802_s0, 128 }
  0x19   :  { %p574_p8 = scmp.ne.s32.totalorder %s802_s0, %s573_s30  ;;  %p577_p9 = scmp.lt.u32.totalorder %s573_s30, %s802_s0 }
  0x1b   :  { %p579_p10 = pnand %p577_p9, %p574_p8 }
  0x1d   :  { %582 = shalt.err (!%p579_p10)
}
  0x1e   :  { %s583_s1 = scalar_lea.vmem %s26_s25, 128  ;;  %p588_p12 = scmp.lt.s32.totalorder %s26_s25, %s26_s25 }
  0x1f   :  { %p584_p11 = scmp.ne.s32.totalorder %s26_s25, %s583_s1  ;;  %p589_p13 = scmp.lt.s32.totalorder %s583_s1, %s583_s1 }
  0x21   :  { %p590_p0 = por %p589_p13, %p588_p12 }
  0x23   :  { %p591_p1 = pnand %p590_p0, %p584_p11 }
  0x25   :  { %594 = shalt.err (!%p591_p1)
}
  0x26   :  { %28 = dma.hbm_to_vmem [thread:$0]  %s802_s0, 128, %s26_s25, [#allocation4]  }
  0x27   :  { %s595_s18 = scalar_lea.hbm %s805_s3, 1024 }
  0x28   :  { %p596_p2 = scmp.ne.s32.totalorder %s805_s3, %s595_s18  ;;  %p599_p3 = scmp.lt.u32.totalorder %s595_s18, %s805_s3 }
  0x2a   :  { %p601_p4 = pnand %p599_p3, %p596_p2 }
  0x2c   :  { %604 = shalt.err (!%p601_p4)
}
  0x2d   :  { %s605_s24 = scalar_lea.vmem %s49_s27, 1024  ;;  %p610_p6 = scmp.lt.s32.totalorder %s49_s27, %s49_s27 }
  0x2e   :  { %p606_p5 = scmp.ne.s32.totalorder %s49_s27, %s605_s24  ;;  %p611_p7 = scmp.lt.s32.totalorder %s605_s24, %s605_s24 }
  0x30   :  { %p612_p8 = por %p611_p7, %p610_p6 }
  0x32   :  { %p613_p9 = pnand %p612_p8, %p606_p5 }
  0x34   :  { %616 = shalt.err (!%p613_p9)
}
  0x35   :  { %54 = dma.hbm_to_vmem [thread:$0]  %s805_s3, 1024, %s49_s27, [#allocation6], %s646_s20, %s646_s20, %s647_s21  }
  0x36   :  { %s650_s26 = smov [#allocation8]   ;;  %s617_s10 = scalar_lea.hbm %s807_s5, 1024 }
  0x37   :  { %s62_s28 = sshll.u32 %s650_s26, 4  ;;  %p618_p10 = scmp.ne.s32.totalorder %s807_s5, %s617_s10  ;;  %s63_s28 = int_to_ptr.vmem [resolvable:$true] %s62_s28 }
  0x38   :  { %p621_p11 = scmp.lt.u32.totalorder %s617_s10, %s807_s5 }
  0x3a   :  { %p623_p12 = pnand %p621_p11, %p618_p10 }
  0x3c   :  { %626 = shalt.err (!%p623_p12)
}
  0x3d   :  { %s627_s12 = scalar_lea.vmem %s63_s28, 1024  ;;  %p632_p0 = scmp.lt.s32.totalorder %s63_s28, %s63_s28 }
  0x3e   :  { %p628_p13 = scmp.ne.s32.totalorder %s63_s28, %s627_s12  ;;  %p633_p1 = scmp.lt.s32.totalorder %s627_s12, %s627_s12 }
  0x40   :  { %p634_p2 = por %p633_p1, %p632_p0 }
  0x42   :  { %p635_p3 = pnand %p634_p2, %p628_p13 }
  0x44   :  { %638 = shalt.err (!%p635_p3)
}
  0x45   :  { %68 = dma.hbm_to_vmem [thread:$0]  %s807_s5, 1024, %s63_s28, [#allocation9], %s646_s20, %s646_s20, %s647_s21  }
  0x46   :  { %639 = dma.done.wait [#allocation4], 128  }
  0x47   :  { %640 = vsyncadd [#allocation4], 4294967168 }
  0x48   :  { %641 = dma.done.wait [#allocation6], 1280  }
  0x49   :  { %642 = vsyncadd [#allocation6], 4294966016 }
  0x4a   :  { %643 = dma.done.wait [#allocation9], 1024  }
  0x4b   :  { %644 = vsyncadd [#allocation9], 4294966272  ;;  %v651_v1 = vmov 0.0   ;;  %vm652_vm0 = vmmov 0   ;;  %v527_v2 = vld [vmem:[#allocation5] sm:$0xff]   ;;  %v528_v3 = vld [vmem:[#allocation5 + $0x8] sm:$0xff]  }
  0x4c   :  { %471 = vmatprep.subr.bf16.mxu0 %v651_v1  ;;  %475 = vmatprep.mubr.msk.bf16.mxu0 %vm652_vm0, %v651_v1  ;;  %v88_v4 = vld [vmem:[#allocation3] sm:$0xff]  ;;  %v529_v5 = vld [vmem:[#allocation7] sm:$0xff]   ;;  %vm113_vm1 = vcmask 261120   ;;  %v531_v8 = vld [vmem:[#allocation7 + $0x10] sm:$0xff]   ;;  %vm414_vm5 = vcmask 7168  }
  0x4d   :  { %479 = vmatprep.subr.bf16.mxu1 %v651_v1  ;;  %495 = vmatprep.mubr.msk.bf16.mxu1 %vm652_vm0, %v651_v1  ;;  %v89_v6 = vpack.c.bf16 %v88_v4, %v88_v4  ;;  %v530_v7 = vld [vmem:[#allocation7 + $0x8] sm:$0xff]   ;;  %v532_v9 = vld [vmem:[#allocation7 + $0x18] sm:$0xff]   ;;  %v533_v10 = vld [vmem:[#allocation7 + $0x20] sm:$0xff]  }
  0x4e   :  { %472 = vmatpush3.bf16.msra.mxu0 %v527_v2  ;;  %480 = vmatpush3.bf16.msra.mxu1 %v529_v5  ;;  %v534_v11 = vld [vmem:[#allocation7 + $0x28] sm:$0xff]   ;;  %v535_v12 = vld [vmem:[#allocation7 + $0x30] sm:$0xff]   ;;  %v536_v13 = vld [vmem:[#allocation7 + $0x38] sm:$0xff]  }
  0x4f   :  { %473 = vmatprep.subr.bf16.mxu0 %v651_v1  ;;  %481 = vmatprep.subr.bf16.mxu1 %v651_v1  ;;  %v537_v14 = vld [vmem:[#allocation8] sm:$0xff]   ;;  %v538_v15 = vld [vmem:[#allocation8 + $0x8] sm:$0xff]   ;;  %v539_v16 = vld [vmem:[#allocation8 + $0x10] sm:$0xff]  }
  0x50   :  { %v423_v17 = vld [vmem:[%s804_s2] ss:$0 sm:$0xff]  ;;  %v540_v28 = vld [vmem:[#allocation8 + $0x18] sm:$0xff]   ;;  %v542_v30 = vld [vmem:[#allocation8 + $0x28] sm:$0xff]  }
  0x51   :  { %v541_v29 = vld [vmem:[#allocation8 + $0x20] sm:$0xff]   ;;  %v543_v31 = vld [vmem:[#allocation8 + $0x30] sm:$0xff]   ;;  %v544_v32 = vld [vmem:[#allocation8 + $0x38] sm:$0xff]  }
  0x52   :  { %474 = vmatpush3.bf16.msra.mxu0 %v528_v3  ;;  %482 = vmatpush3.bf16.msra.mxu1 %v530_v7  ;;  %v428_v33 = vld [vmem:[%s806_s4] ss:$0 sm:$0xff] }
  0x53   :  { %499 = vmatprep.subr.bf16.mxu0 %v651_v1  ;;  %483 = vmatprep.subr.bf16.mxu1 %v651_v1  ;;  %v438_v44 = vld [vmem:[%s808_s6] ss:$0 sm:$0xff] }
  0x54   :  { %v448_v53 = vld [vmem:[%s809_s7] ss:$0 sm:$0xff] }
  0x55   :  { %476 = vmatmul.mubr.msk.bf16.vlgmr.msra.gmra.mrb[0].mxu0 %vm113_vm1, %v89_v6  ;;  %v449_v56 = vld [vmem:[#allocation2] ss:$0 sm:$0xff] }
  0x56   :  { %515 = vmatprep.mubr.msk.bf16.mxu0 %vm652_vm0, %v651_v1  ;;  %484 = vmatpush3.bf16.msra.mxu1 %v531_v8 }
  0x57   :  { %485 = vmatprep.subr.bf16.mxu1 %v651_v1  ;;  %500 = vmatpush3.bf16.msra.mxu0 %v537_v14 }
  0x58   :  { %501 = vmatprep.subr.bf16.mxu0 %v651_v1 }
  0x5a   :  { %486 = vmatpush3.bf16.msra.mxu1 %v532_v9 }
  0x5b   :  { %487 = vmatprep.subr.bf16.mxu1 %v651_v1  ;;  %502 = vmatpush3.bf16.msra.mxu0 %v538_v15 }
  0x5c   :  { %503 = vmatprep.subr.bf16.mxu0 %v651_v1 }
  0x5e   :  { %488 = vmatpush3.bf16.msra.mxu1 %v533_v10 }
  0x5f   :  { %489 = vmatprep.subr.bf16.mxu1 %v651_v1  ;;  %504 = vmatpush3.bf16.msra.mxu0 %v539_v16 }
  0x60   :  { %505 = vmatprep.subr.bf16.mxu0 %v651_v1 }
  0x62   :  { %490 = vmatpush3.bf16.msra.mxu1 %v534_v11 }
  0x63   :  { %491 = vmatprep.subr.bf16.mxu1 %v651_v1  ;;  %506 = vmatpush3.bf16.msra.mxu0 %v540_v28 }
  0x64   :  { %507 = vmatprep.subr.bf16.mxu0 %v651_v1 }
  0x66   :  { %492 = vmatpush3.bf16.msra.mxu1 %v535_v12 }
  0x67   :  { %493 = vmatprep.subr.bf16.mxu1 %v651_v1  ;;  %508 = vmatpush3.bf16.msra.mxu0 %v541_v29 }
  0x68   :  { %509 = vmatprep.subr.bf16.mxu0 %v651_v1 }
  0x6a   :  { %494 = vmatpush3.bf16.msra.mxu1 %v536_v13 }
  0x6b   :  { %510 = vmatpush3.bf16.msra.mxu0 %v542_v30 }
  0x6c   :  { %511 = vmatprep.subr.bf16.mxu0 %v651_v1 }
  0x6f   :  { %512 = vmatpush3.bf16.msra.mxu0 %v543_v31 }
  0x70   :  { %513 = vmatprep.subr.bf16.mxu0 %v651_v1 }
  0x73   :  { %514 = vmatpush3.bf16.msra.mxu0 %v544_v32 }
 0x128   :  { %v151_v18 = vpop.f32.mrb[0].mxu0 }
 0x129   :  { %v152_v19 = vadd.f32 %v423_v17, %v151_v18  ;;  %v477_v20 = vpop.f32.mrb[1].mxu0 }
 0x12a   :  { %v154_v21 = vpop.f32.mrb[2].mxu0 }
 0x12b   :  { %v158_v22 = vmul.f32 1.442695, %v152_v19  ;;  %v478_v23 = vpop.f32.mrb[3].mxu0  ;;  %vm157_vm2 = vcmp.gt.f32.partialorder %v152_v19, 0.0 }
 0x12d   :  { %545 = vpow2.f32 %v158_v22 }
 0x137   :  { %v546_v24 = vpop.eup %545 }
 0x138   :  { %v427_v25 = vadd.f32 -1.0, %v546_v24 }
 0x13a   :  { %v161_v26 = vsel %vm157_vm2, %v152_v19, %v427_v25 }
 0x13b   :  { %v162_v27 = vpack.c.bf16 %v161_v26, %v161_v26 }
 0x13d   :  { %496 = vmatmul.mubr.bf16.vlgmr.msra.gmra.mrb[0].mxu1 %v162_v27 }
 0x210   :  { %v268_v34 = vpop.f32.mrb[0].mxu1 }
 0x211   :  { %v269_v35 = vadd.f32 %v428_v33, %v268_v34  ;;  %v497_v36 = vpop.f32.mrb[1].mxu1 }
 0x212   :  { %v271_v37 = vpop.f32.mrb[2].mxu1 }
 0x213   :  { %v275_v38 = vmul.f32 1.442695, %v269_v35  ;;  %v498_v39 = vpop.f32.mrb[3].mxu1  ;;  %vm274_vm3 = vcmp.gt.f32.partialorder %v269_v35, 0.0 }
 0x215   :  { %547 = vpow2.f32 %v275_v38 }
 0x21f   :  { %v548_v40 = vpop.eup %547 }
 0x220   :  { %v437_v41 = vadd.f32 -1.0, %v548_v40 }
 0x222   :  { %v278_v42 = vsel %vm274_vm3, %v269_v35, %v437_v41 }
 0x223   :  { %v279_v43 = vpack.c.bf16 %v278_v42, %v278_v42 }
 0x225   :  { %516 = vmatmul.mubr.bf16.vlgmr.msra.gmra.mrb[4].mxu0 %v279_v43 }
 0x2f8   :  { %v385_v45 = vpop.f32.mrb[4].mxu0 }
 0x2f9   :  { %v386_v46 = vadd.f32 %v438_v44, %v385_v45  ;;  %v517_v47 = vpop.f32.mrb[5].mxu0 }
 0x2fa   :  { %v388_v48 = vpop.f32.mrb[6].mxu0 }
 0x2fb   :  { %v392_v49 = vmul.f32 1.442695, %v386_v46  ;;  %v518_v50 = vpop.f32.mrb[7].mxu0  ;;  %vm391_vm4 = vcmp.gt.f32.partialorder %v386_v46, 0.0 }
 0x2fd   :  { %549 = vpow2.f32 %v392_v49 }
 0x307   :  { %v550_v51 = vpop.eup %549 }
 0x308   :  { %v447_v52 = vadd.f32 -1.0, %v550_v51 }
 0x30a   :  { %v395_v54 = vsel %vm391_vm4, %v386_v46, %v447_v52 }
 0x30b   :  { %v403_v55 = vmul.f32 %v448_v53, %v395_v54 }
 0x30d   :  { %404 = vadd.xlane.f32.xlu0 %v403_v55 }
 0x39a   :  { %v405_v57 = vpop.xlane.xlu0 %404 }
 0x39b   :  { %v413_v58 = vadd.f32 %v449_v56, %v405_v57 }
 0x39d   :  { %415 = vst.msk [vmem:[%s811_s9] sm:$0xff] %vm414_vm5, %v413_v58 }
 0x39e   :  { %420 = vsyncpa [#allocation4], 1 }
 0x39f   :  { %421 = vsyncpa [#allocation6], 1 }
 0x3a0   :  { %422 = vsyncpa [#allocation9], 1 }

</bundles_post_ra>
